<compile_context>
chip_gen: v7x
topology: tpu7x:2x2x1
jax: 0.10.0
libtpu: 0.0.40
codegen_flags: <defaults>
</compile_context>

<pallas_src>
import jax
import jax.numpy as jnp
from jax.experimental import pallas as pl
from jax.experimental.pallas import tpu as pltpu


def _clip_kernel(x_ref, p_ref, o_ref):
    x = x_ref[...]                # (tile_rows, tile_cols)
    p = p_ref[...]                # (tile_rows, 4): [x1, x2, y1, slopes]
    x1 = p[:, 0:1]                # (tile_rows, 1) -> lane broadcast
    x2 = p[:, 1:2]
    y1 = p[:, 2:3]
    s = p[:, 3:4]
    r1 = jnp.maximum(x - x1, 0.0)
    r2 = jnp.maximum(x - x2, 0.0)
    o_ref[...] = s * (r1 - r2) + y1


def _round_up(a, b):
    return -(-a // b) * b


def _round_down(a, b):
    return (a // b) * b


def _select_budget():
    """Return (target_block_bytes, vmem_limit_bytes) sized to the chip's VMEM."""
    vmem_cap = None
    try:
        vmem_cap = pltpu.get_tpu_info().vmem_capacity_bytes
    except Exception:
        vmem_cap = None
    if vmem_cap is not None and vmem_cap >= 96 * 1024 * 1024:
        # v5e / v6e: 128 MiB physical VMEM -> 4 MiB blocks, 64 MiB scoped limit.
        return 4 * 1024 * 1024, 64 * 1024 * 1024
    # v7x (64 MiB shared by 2 TCs) or unknown: stay conservative.
    return 2 * 1024 * 1024, 32 * 1024 * 1024


def clip_activation_forward(x, x1, x2, y1, slopes):
    """x: (B, C, H, W) float32.  x1/x2/y1/slopes: (1, C, 1, 1) float32."""
    B, C, H, W = x.shape
    HW = H * W
    rows = B * C
    itemsize = jnp.dtype(x.dtype).itemsize

    # torch.nan_to_num(slopes) from the module's __init__
    slopes = jnp.nan_to_num(slopes)

    x2d = x.reshape(rows, HW)   # row-major reshape: free

    def per_row(p):
        # (1, C, 1, 1) -> (B*C,) aligned with x2d rows (B-major, C-minor)
        return jnp.broadcast_to(
            jnp.asarray(p, x.dtype).reshape(1, C), (B, C)).reshape(rows)

    # Pack the four per-row params into one (rows, 4) array (tiny).
    params = jnp.stack(
        [per_row(x1), per_row(x2), per_row(y1), per_row(slopes)], axis=-1)

    LANE, SUBLANE = 128, 8
    target_block_bytes, vmem_limit = _select_budget()

    # Column tile: lane-dense multiple of 128 so the bulk of stores are
    # unmasked; ragged tail handled by a partial last block.  Cap the width so
    # even an 8-row block stays within the byte budget (bounds VMEM for huge HW).
    if HW >= LANE:
        max_cols = max(LANE,
                       _round_down(target_block_bytes // (SUBLANE * itemsize), LANE))
        tile_cols = min(_round_down(HW, LANE), max_cols)
    else:
        tile_cols = HW   # full-extent last dim (< 128) is allowed

    # Row tile: fill the block-byte budget, multiple of 8, never larger than
    # the rows actually present (ragged tail handled by a partial last block).
    if rows >= SUBLANE:
        tile_rows = max(SUBLANE,
                        _round_down(target_block_bytes // (tile_cols * itemsize),
                                    SUBLANE))
        tile_rows = min(tile_rows, 1024, _round_down(rows, SUBLANE))
    else:
        tile_rows = rows  # full-extent sublane dim (< 8) is allowed

    # Column axis innermost/fastest so the params block (i, 0) DMA is elided
    # across consecutive column steps.
    grid = (pl.cdiv(rows, tile_rows), pl.cdiv(HW, tile_cols))

    data_spec = pl.BlockSpec((tile_rows, tile_cols), lambda i, j: (i, j))
    par_spec = pl.BlockSpec((tile_rows, 4), lambda i, j: (i, 0))

    out2d = pl.pallas_call(
        _clip_kernel,
        out_shape=jax.ShapeDtypeStruct((rows, HW), x.dtype),
        grid_spec=pltpu.PrefetchScalarGridSpec(
            num_scalar_prefetch=0,
            grid=grid,
            in_specs=[data_spec, par_spec],
            out_specs=data_spec,
        ),
        compiler_params=pltpu.CompilerParams(
            dimension_semantics=("parallel", "parallel"),
            vmem_limit_bytes=vmem_limit,
        ),
    )(x2d, params)

    return out2d.reshape(B, C, H, W)


def _reference(x, x1, x2, y1, slopes):
    slopes = jnp.nan_to_num(slopes)
    return slopes * (jnp.maximum(x - x1, 0.0) - jnp.maximum(x - x2, 0.0)) + y1


def _make_inputs(key, B, C, H, W):
    kx, k1, kw, ky, ks = jax.random.split(key, 5)
    x = jax.random.normal(kx, (B, C, H, W), dtype=jnp.float32)
    x1 = jax.random.normal(k1, (1, C, 1, 1), dtype=jnp.float32) * 0.5
    x2 = x1 + jnp.abs(jax.random.normal(kw, (1, C, 1, 1), dtype=jnp.float32)) + 0.1
    y1 = jax.random.normal(ky, (1, C, 1, 1), dtype=jnp.float32) * 0.1
    slopes = jax.random.normal(ks, (1, C, 1, 1), dtype=jnp.float32)
    return x, x1, x2, y1, slopes


if __name__ == "__main__":
    # Primary shape (matches the module's expected small test case).
    x, x1, x2, y1, slopes = _make_inputs(jax.random.PRNGKey(0), 2, 4, 16, 16)
    out = clip_activation_forward(x, x1, x2, y1, slopes)
    out = jax.block_until_ready(out)
    ref = _reference(x, x1, x2, y1, slopes)
    assert out.shape == x.shape
    assert jnp.allclose(out, ref, atol=1e-5, rtol=1e-5), "mismatch vs reference"

    # Secondary shape: exercises ragged rows (B*C = 15 -> partial row block)
    # and HW < 128 (narrow lane dim) without any wrapper-side pad/slice.
    x, x1, x2, y1, slopes = _make_inputs(jax.random.PRNGKey(1), 3, 5, 8, 8)
    out = clip_activation_forward(x, x1, x2, y1, slopes)
    out = jax.block_until_ready(out)
    ref = _reference(x, x1, x2, y1, slopes)
    assert out.shape == x.shape
    assert jnp.allclose(out, ref, atol=1e-5, rtol=1e-5), "mismatch vs reference (ragged case)"

    print("KERNEL_OK")
</pallas_src>

<mosaic_0001>
module attributes {stable_mosaic.version = 11 : i64} {
  func.func @_clip_kernel(%arg0: i32, %arg1: i32, %arg2: memref<8x256xf32, #tpu.memory_space<vmem>>, %arg3: memref<8x4xf32, #tpu.memory_space<vmem>>, %arg4: memref<8x256xf32, #tpu.memory_space<vmem>>) attributes {dimension_semantics = [#tpu.dimension_semantics<parallel>, #tpu.dimension_semantics<parallel>], iteration_bounds = array<i64: 1, 1>, scalar_prefetch = 0 : i64, scratch_operands = 0 : i64, tpu.core_type = #tpu.core_type<tc>, window_params = [{transform_indices = @transform_0, window_bounds = array<i64: 8, 256>}, {transform_indices = @transform_1, window_bounds = array<i64: 8, 4>}, {transform_indices = @transform_2, window_bounds = array<i64: 8, 256>}]} {
    %c0 = arith.constant 0 : index
    %c0_0 = arith.constant 0 : index
    %0 = vector.load %arg2[%c0, %c0_0] : memref<8x256xf32, #tpu.memory_space<vmem>>, vector<8x256xf32>
    %c0_1 = arith.constant 0 : index
    %c0_2 = arith.constant 0 : index
    %1 = vector.load %arg3[%c0_1, %c0_2] : memref<8x4xf32, #tpu.memory_space<vmem>>, vector<8x4xf32>
    %2 = vector.extract_strided_slice %1 {offsets = [0, 0], sizes = [8, 1], strides = [1, 1]} : vector<8x4xf32> to vector<8x1xf32>
    %3 = vector.extract_strided_slice %1 {offsets = [0, 1], sizes = [8, 1], strides = [1, 1]} : vector<8x4xf32> to vector<8x1xf32>
    %4 = vector.extract_strided_slice %1 {offsets = [0, 2], sizes = [8, 1], strides = [1, 1]} : vector<8x4xf32> to vector<8x1xf32>
    %5 = vector.extract_strided_slice %1 {offsets = [0, 3], sizes = [8, 1], strides = [1, 1]} : vector<8x4xf32> to vector<8x1xf32>
    %6 = vector.broadcast %2 : vector<8x1xf32> to vector<8x256xf32>
    %7 = arith.subf %0, %6 : vector<8x256xf32>
    %cst = arith.constant 0.000000e+00 : f32
    %8 = vector.broadcast %cst : f32 to vector<8x256xf32>
    %9 = arith.maximumf %7, %8 : vector<8x256xf32>
    %10 = vector.broadcast %3 : vector<8x1xf32> to vector<8x256xf32>
    %11 = arith.subf %0, %10 : vector<8x256xf32>
    %cst_3 = arith.constant 0.000000e+00 : f32
    %12 = vector.broadcast %cst_3 : f32 to vector<8x256xf32>
    %13 = arith.maximumf %11, %12 : vector<8x256xf32>
    %14 = arith.subf %9, %13 : vector<8x256xf32>
    %15 = vector.broadcast %5 : vector<8x1xf32> to vector<8x256xf32>
    %16 = arith.mulf %15, %14 : vector<8x256xf32>
    %17 = vector.broadcast %4 : vector<8x1xf32> to vector<8x256xf32>
    %18 = arith.addf %16, %17 : vector<8x256xf32>
    %c0_4 = arith.constant 0 : index
    %c0_5 = arith.constant 0 : index
    %19 = vector.load %arg4[%c0_4, %c0_5] : memref<8x256xf32, #tpu.memory_space<vmem>>, vector<8x256xf32>
    tpu.vector_store %arg4[%c0_4, %c0_5], %18 {strides = array<i32>} : memref<8x256xf32, #tpu.memory_space<vmem>>, vector<8x256xf32>,
    return
  }
  func.func @transform_0(%arg0: i32, %arg1: i32) -> (i32, i32) {
    %c0_i32 = arith.constant 0 : i32
    return %arg0, %arg1 : i32, i32
  }
  func.func @transform_1(%arg0: i32, %arg1: i32) -> (i32, i32) {
    %c0_i32 = arith.constant 0 : i32
    %c0_i32_0 = arith.constant 0 : i32
    return %arg0, %c0_i32 : i32, i32
  }
  func.func @transform_2(%arg0: i32, %arg1: i32) -> (i32, i32) {
    %c0_i32 = arith.constant 0 : i32
    return %arg0, %arg1 : i32, i32
  }
}

</mosaic_0001>

<bundles_post_ra>
// kernel: tpu_custom_call.1
= control target key start
LH: loop header
LB: loop body
LE: loop exit
PB: predicated region body
PF: predicated region fallthrough
CT: control target
= control target key end

     0   :  { %7 = vsyncpa [#allocation3], 0  ;;  %s182_s0 = inlined_call_operand.hbm [shape: f32[8,256], index: 0, kind: input, shape index: {}]   ;;  %s183_s1 = inlined_call_operand.vmem [shape: f32[8,4], index: 1, kind: input, shape index: {}]   ;;  %s184_s2 = inlined_call_operand.hbm [shape: f32[8,256], index: 2, kind: output, shape index: {}]  }
   0x1   :  { %8 = vsyncpa [#allocation4], 0  ;;  %s134_s9 = smov [#allocation2]   ;;  %s86_s13 = scalar_lea.hbm %s182_s0, 256 }
   0x2   :  { %s15_s10 = sshll.u32 %s134_s9, 4  ;;  %p87_p0 = scmp.ne.s32.totalorder %s182_s0, %s86_s13  ;;  %s16_s10 = int_to_ptr.vmem [resolvable:$true] %s15_s10 }
   0x3   :  { %p90_p1 = scmp.lt.u32.totalorder %s86_s13, %s182_s0 }
   0x5   :  { %p92_p2 = pnand %p90_p1, %p87_p0 }
   0x7   :  { %95 = shalt.err (!%p92_p2)
}
   0x8   :  { %s96_s18 = scalar_lea.vmem %s16_s10, 256  ;;  %p101_p4 = scmp.lt.s32.totalorder %s16_s10, %s16_s10 }
   0x9   :  { %p97_p3 = scmp.ne.s32.totalorder %s16_s10, %s96_s18  ;;  %p102_p5 = scmp.lt.s32.totalorder %s96_s18, %s96_s18 }
   0xb   :  { %p103_p6 = por %p102_p5, %p101_p4 }
   0xd   :  { %p104_p7 = pnand %p103_p6, %p97_p3 }
   0xf   :  { %107 = shalt.err (!%p104_p7)
}
  0x10   :  { %18 = dma.hbm_to_vmem [thread:$0]  %s182_s0, 256, %s16_s10, [#allocation3]  }
  0x11   :  { %130 = dma.done.wait [#allocation3], 256  }
  0x12   :  { %131 = vsyncadd [#allocation3], 4294967040  ;;  %v135_v0 = vmov 0   ;;  %v136_v1 = vmov 3   ;;  %v26_v2 = vld [vmem:[%s183_s1] sm:$0xff]  ;;  %v137_v3 = vmov 1  }
  0x13   :  { %81 = vset.pattern.permute.xlu0 %v135_v0  ;;  %83 = vset.pattern.permute.xlu1 %v136_v1  ;;  %v138_v4 = vmov 2   ;;  %v24_v6 = vld [vmem:[#allocation2] sm:$0xff]  ;;  %v25_v7 = vld [vmem:[#allocation2 + $0x8] sm:$0xff]  ;;  %s139_s0 = smov [#allocation5]  }
  0x14   :  { %29 = vperm.xlu0 %81, %v26_v2   ;;  %47 = vperm.xlu1 %83, %v26_v2   ;;  %s66_s1 = sshll.u32 %s139_s0, 4  ;;  %s67_s1 = int_to_ptr.vmem [resolvable:$true] %s66_s1 }
  0x15   :  { %s108_s23 = scalar_lea.vmem %s67_s1, 256  ;;  %p113_p9 = scmp.lt.s32.totalorder %s67_s1, %s67_s1 }
  0x16   :  { %p109_p8 = scmp.ne.s32.totalorder %s67_s1, %s108_s23  ;;  %p114_p10 = scmp.lt.s32.totalorder %s108_s23, %s108_s23 }
  0x18   :  { %82 = vset.pattern.permute.xlu0 %v137_v3  ;;  %84 = vset.pattern.permute.xlu1 %v138_v4  ;;  %p115_p11 = por %p114_p10, %p113_p9 }
  0x19   :  { %37 = vperm.xlu0 %82, %v26_v2   ;;  %53 = vperm.xlu1 %84, %v26_v2  }
  0x1a   :  { %p116_p12 = pnand %p115_p11, %p109_p8 }
  0x1d   :  { %85 = vset.pattern.permute.xlu0 %v138_v4 }
  0x93   :  { %v30_v5 = vpop.permute.xlu0 %29  ;;  %v48_v11 = vpop.permute.xlu1 %47 }
  0x94   :  { %v32_v8 = vsub.f32 %v24_v6, %v30_v5  ;;  %v33_v9 = vsub.f32 %v25_v7, %v30_v5 }
  0x96   :  { %v34_v14 = vmax.f32 %v32_v8, 0.0  ;;  %v35_v15 = vmax.f32 %v33_v9, 0.0 }
  0x98   :  { %v38_v10 = vpop.permute.xlu0 %37  ;;  %v54_v20 = vpop.permute.xlu1 %53 }
  0x99   :  { %v40_v12 = vsub.f32 %v24_v6, %v38_v10  ;;  %v41_v13 = vsub.f32 %v25_v7, %v38_v10 }
  0x9b   :  { %v42_v16 = vmax.f32 %v40_v12, 0.0  ;;  %v43_v17 = vmax.f32 %v41_v13, 0.0 }
  0x9d   :  { %v44_v18 = vsub.f32 %v34_v14, %v42_v16  ;;  %v45_v19 = vsub.f32 %v35_v15, %v43_v17 }
  0x9f   :  { %v50_v21 = vmul.f32 %v48_v11, %v44_v18  ;;  %v51_v22 = vmul.f32 %v48_v11, %v45_v19 }
  0xa1   :  { %v56_v23 = vadd.f32 %v54_v20, %v50_v21  ;;  %v57_v24 = vadd.f32 %v54_v20, %v51_v22 }
  0xa3   :  { %58 = vst [vmem:[#allocation5] sm:$0xff] %v56_v23  ;;  %59 = vst [vmem:[#allocation5 + $0x8] sm:$0xff] %v57_v24 }
  0xa4   :  { %119 = shalt.err (!%p116_p12)
}
  0xa5   :  { %s120_s26 = scalar_lea.hbm %s184_s2, 256 }
  0xa6   :  { %p121_p13 = scmp.ne.s32.totalorder %s184_s2, %s120_s26  ;;  %p124_p0 = scmp.lt.u32.totalorder %s120_s26, %s184_s2 }
  0xa8   :  { %p126_p1 = pnand %p124_p0, %p121_p13 }
  0xaa   :  { %129 = shalt.err (!%p126_p1)
}
  0xab   :  { %69 = dma.vmem_to_hbm [thread:$0]  %s67_s1, 256, %s184_s2, [#allocation4]  }
  0xac   :  { %132 = dma.done.wait [#allocation4], 256  }
  0xad   :  { %133 = vsyncadd [#allocation4], 4294967040 }
  0xae   :  { %73 = vsyncpa [#allocation3], 1 }
  0xaf   :  { %74 = vsyncpa [#allocation4], 1 }

</bundles_post_ra>
